<compile_context>
chip_gen: v7x
topology: tpu7x:2x2x1
jax: 0.10.0
libtpu: 0.0.40
codegen_flags: <defaults>
</compile_context>

<pallas_src>
import functools

import jax
import jax.numpy as jnp
import numpy as np
from jax.experimental import pallas as pl
from jax.experimental.pallas import tpu as pltpu

BETA = 0.99
STEP_START = 2000

LANES = 128        # lane width of the packed parameter buffer
ROW_TILE = 1024    # rows per grid step: 1024*128*4B = 512 KiB per operand block


# ----------------------------------------------------------------------------
# Packed parameter state (EMA state lives in this layout permanently)
# ----------------------------------------------------------------------------
def pack_params(params):
    """Flatten a param pytree into a (rows, 128) f32 buffer (done ONCE at init)."""
    leaves, treedef = jax.tree_util.tree_flatten(params)
    shapes = [l.shape for l in leaves]
    dtypes = [l.dtype for l in leaves]
    sizes = [int(np.prod(s)) for s in shapes]
    total = sum(sizes)

    rows = -(-max(total, 1) // LANES)           # ceil(total / 128)
    rows = max(8, -(-rows // 8) * 8)            # sublane-align
    if rows > ROW_TILE:                         # make divisible by the row tile
        rows = -(-rows // ROW_TILE) * ROW_TILE
    padded = rows * LANES

    flat = jnp.concatenate([l.reshape(-1).astype(jnp.float32) for l in leaves])
    flat = jnp.pad(flat, (0, padded - total))
    meta = (treedef, shapes, dtypes, sizes, total)
    return flat.reshape(rows, LANES), meta


def unpack_params(packed, meta):
    """Inverse of pack_params (only needed when the EMA weights are consumed)."""
    treedef, shapes, dtypes, sizes, total = meta
    flat = packed.reshape(-1)[:total]
    leaves, off = [], 0
    for s, d, sz in zip(shapes, dtypes, sizes):
        leaves.append(flat[off:off + sz].reshape(s).astype(d))
        off += sz
    return jax.tree_util.tree_unflatten(treedef, leaves)


# ----------------------------------------------------------------------------
# Kernel 1: EMA lerp   ema = ema*beta_eff + orig*(1-beta_eff)
# ----------------------------------------------------------------------------
def _ema_lerp_kernel(beta_ref, ema_ref, orig_ref, out_ref):
    beta = beta_ref[0]                                   # SMEM scalar
    out_ref[...] = ema_ref[...] * beta + orig_ref[...] * (1.0 - beta)


def _ema_lerp_call(ema2d, orig2d, beta_arr):
    R, C = ema2d.shape
    TR = min(R, ROW_TILE)                                # R is a multiple of TR
    return pl.pallas_call(
        _ema_lerp_kernel,
        out_shape=jax.ShapeDtypeStruct((R, C), jnp.float32),
        grid=(R // TR,),
        in_specs=[
            pl.BlockSpec(memory_space=pltpu.MemorySpace.SMEM),   # beta_eff scalar
            pl.BlockSpec((TR, C), lambda i: (i, 0)),             # ema tile
            pl.BlockSpec((TR, C), lambda i: (i, 0)),             # live-model tile
        ],
        out_specs=pl.BlockSpec((TR, C), lambda i: (i, 0)),
        input_output_aliases={1: 0},                      # update ema in place
        compiler_params=pltpu.CompilerParams(
            dimension_semantics=("parallel",)),           # 2-TC sharding on v7x
    )(beta_arr, ema2d, orig2d)


@functools.partial(jax.jit, donate_argnums=(0,))
def ema_update_packed(ema_packed, orig_packed, step):
    """EMA.update_model on packed state. Gate is a select on the blend factor,
    so step<step_start is an identity lerp inside the same compiled program."""
    beta_eff = jnp.where(step >= STEP_START, jnp.float32(BETA), jnp.float32(1.0))
    return _ema_lerp_call(ema_packed, orig_packed, beta_eff.reshape(1))


# ----------------------------------------------------------------------------
# Kernel 2: wrapped model forward — 3x3 conv (pad=1) + bias + ReLU
#   in-kernel im2col: 9 static shifted slices, 9 MXU matmuls into an f32 acc,
#   output lane-dense with Cout padded to 128.
# ----------------------------------------------------------------------------
COUT_PAD = 128


def _conv3x3_kernel(x_ref, w_ref, b_ref, o_ref, *, H, W, Cin):
    x = x_ref[0]                                        # (H+2, W+2, Cin) in VMEM
    acc = jnp.zeros((H * W, COUT_PAD), jnp.float32)
    for i in range(3):
        for j in range(3):
            # tap (i, j): shifted window, merged to a 2D patch matrix (retile only)
            patch = x[i:i + H, j:j + W, :].reshape(H * W, Cin)
            acc = acc + jnp.dot(patch, w_ref[i * 3 + j],
                                preferred_element_type=jnp.float32)
    acc = acc + b_ref[...]                              # (H*W, 128) + (1, 128)
    o_ref[0] = jnp.maximum(acc, 0.0).reshape(H, W, COUT_PAD)


@jax.jit
def ema_model_forward(params, x):
    """EMA.forward == wrapped model forward with EMA params. x: [N, C, H, W] NCHW."""
    Wt, b = params["conv_w"], params["conv_b"]          # (Cout, Cin, 3, 3), (Cout,)
    N, Cin, H, Wd = x.shape
    Cout = Wt.shape[0]

    # Boundary layout glue only (module contract is NCHW): NCHW -> NHWC + halo pad.
    x_nhwc = jnp.transpose(x, (0, 2, 3, 1)).astype(jnp.float32)
    xp = jnp.pad(x_nhwc, ((0, 0), (1, 1), (1, 1), (0, 0)))        # (N, H+2, W+2, Cin)

    # Tap-major weights, Cout zero-padded to a full 128-lane output.
    w_taps = jnp.transpose(Wt, (2, 3, 1, 0)).reshape(9, Cin, Cout).astype(jnp.float32)
    w_taps = jnp.pad(w_taps, ((0, 0), (0, 0), (0, COUT_PAD - Cout)))
    b_pad = jnp.pad(b.astype(jnp.float32), (0, COUT_PAD - Cout)).reshape(1, COUT_PAD)

    kernel = functools.partial(_conv3x3_kernel, H=H, W=Wd, Cin=Cin)
    out = pl.pallas_call(
        kernel,
        out_shape=jax.ShapeDtypeStruct((N, H, Wd, COUT_PAD), jnp.float32),
        grid=(N,),
        in_specs=[
            pl.BlockSpec((1, H + 2, Wd + 2, Cin), lambda n: (n, 0, 0, 0)),
            pl.BlockSpec((9, Cin, COUT_PAD), lambda n: (0, 0, 0)),
            pl.BlockSpec((1, COUT_PAD), lambda n: (0, 0)),
        ],
        out_specs=pl.BlockSpec((1, H, Wd, COUT_PAD), lambda n: (n, 0, 0, 0)),
        compiler_params=pltpu.CompilerParams(
            dimension_semantics=("parallel",)),
    )(xp, w_taps, b_pad)

    # Back to the module's NCHW contract (drop the zero-padded output channels).
    return jnp.transpose(out[..., :Cout], (0, 3, 1, 2))


# ----------------------------------------------------------------------------
# Main
# ----------------------------------------------------------------------------
if __name__ == "__main__":
    key = jax.random.PRNGKey(0)
    k_x, k_w, k_b, k_w2 = jax.random.split(key, 4)

    N, Cin, H, Wd, Cout = 2, 4, 16, 16, 8
    x = jax.random.normal(k_x, (N, Cin, H, Wd), dtype=jnp.float32)

    # "original" (live) model parameters
    orig_params = {
        "conv_w": 0.1 * jax.random.normal(k_w, (Cout, Cin, 3, 3), dtype=jnp.float32),
        "conv_b": 0.05 * jax.random.normal(k_b, (Cout,), dtype=jnp.float32),
    }

    # EMA.__init__: deep copy -> pack ONCE; EMA state stays packed forever after.
    ema_packed, meta = pack_params(orig_params)

    # Simulate training drift of the live model.
    drifted_params = {
        "conv_w": orig_params["conv_w"]
        + 0.01 * jax.random.normal(k_w2, (Cout, Cin, 3, 3), dtype=jnp.float32),
        "conv_b": orig_params["conv_b"] + 0.01,
    }
    # In a real trainer the live params would also be kept flat/packed by the
    # optimizer; here we pack them once per "step" for the demo.
    drifted_packed, _ = pack_params(drifted_params)

    # step < step_start -> gated (identity blend), same compiled program.
    ema_packed = ema_update_packed(ema_packed, drifted_packed, jnp.int32(100))
    # step >= step_start -> EMA lerp runs on the MXU-free, memory-bound VPU path.
    ema_packed = ema_update_packed(ema_packed, drifted_packed, jnp.int32(2500))

    # Unpack only when the EMA weights are consumed (forward / eval / export).
    ema_params = unpack_params(ema_packed, meta)

    # EMA.forward(*args) == self.model(*args) with the EMA parameters.
    y = ema_model_forward(ema_params, x)
    y = jax.block_until_ready(y)

    # --- correctness checks against plain-JAX references ---
    ref_ema = jax.tree_util.tree_map(
        lambda e, o: e * BETA + o * (1.0 - BETA), orig_params, drifted_params)
    for kname in ("conv_w", "conv_b"):
        np.testing.assert_allclose(np.asarray(ema_params[kname]),
                                   np.asarray(ref_ema[kname]), atol=1e-5, rtol=1e-5)

    ref_y = jax.lax.conv_general_dilated(
        x, ema_params["conv_w"], window_strides=(1, 1), padding="SAME",
        dimension_numbers=("NCHW", "OIHW", "NCHW"))
    ref_y = jnp.maximum(ref_y + ema_params["conv_b"].reshape(1, Cout, 1, 1), 0.0)
    np.testing.assert_allclose(np.asarray(y), np.asarray(ref_y), atol=1e-4, rtol=1e-4)

    assert y.shape == (N, Cout, H, Wd)
    print("KERNEL_OK")
</pallas_src>

<mosaic_0001>
module attributes {stable_mosaic.version = 11 : i64} {
  func.func @_ema_lerp_kernel(%arg0: i32, %arg1: memref<1xf32, #tpu.memory_space<smem>>, %arg2: memref<8x128xf32, #tpu.memory_space<vmem>>, %arg3: memref<8x128xf32, #tpu.memory_space<vmem>>, %arg4: memref<8x128xf32, #tpu.memory_space<vmem>>) attributes {dimension_semantics = [#tpu.dimension_semantics<parallel>], iteration_bounds = array<i64: 1>, scalar_prefetch = 0 : i64, scratch_operands = 0 : i64, tpu.core_type = #tpu.core_type<tc>, window_params = [{transform_indices = @transform_0, window_bounds = array<i64: 1>}, {transform_indices = @transform_1, window_bounds = array<i64: 8, 128>}, {transform_indices = @transform_2, window_bounds = array<i64: 8, 128>}, {transform_indices = @transform_3, window_bounds = array<i64: 8, 128>}]} {
    %c0 = arith.constant 0 : index
    %0 = memref.load %arg1[%c0] : memref<1xf32, #tpu.memory_space<smem>>
    %c0_0 = arith.constant 0 : index
    %c0_1 = arith.constant 0 : index
    %1 = vector.load %arg2[%c0_0, %c0_1] : memref<8x128xf32, #tpu.memory_space<vmem>>, vector<8x128xf32>
    %2 = vector.broadcast %0 : f32 to vector<8x128xf32>
    %3 = arith.mulf %1, %2 : vector<8x128xf32>
    %c0_2 = arith.constant 0 : index
    %c0_3 = arith.constant 0 : index
    %4 = vector.load %arg3[%c0_2, %c0_3] : memref<8x128xf32, #tpu.memory_space<vmem>>, vector<8x128xf32>
    %cst = arith.constant 1.000000e+00 : f32
    %5 = arith.subf %cst, %0 : f32
    %6 = vector.broadcast %5 : f32 to vector<8x128xf32>
    %7 = arith.mulf %4, %6 : vector<8x128xf32>
    %8 = arith.addf %3, %7 : vector<8x128xf32>
    %c0_4 = arith.constant 0 : index
    %c0_5 = arith.constant 0 : index
    %9 = vector.load %arg4[%c0_4, %c0_5] : memref<8x128xf32, #tpu.memory_space<vmem>>, vector<8x128xf32>
    tpu.vector_store %arg4[%c0_4, %c0_5], %8 {strides = array<i32>} : memref<8x128xf32, #tpu.memory_space<vmem>>, vector<8x128xf32>,
    return
  }
  func.func @transform_0(%arg0: i32) -> i32 {
    %c0_i32 = arith.constant 0 : i32
    %c0_i32_0 = arith.constant 0 : i32
    return %c0_i32 : i32
  }
  func.func @transform_1(%arg0: i32) -> (i32, i32) {
    %c0_i32 = arith.constant 0 : i32
    %c0_i32_0 = arith.constant 0 : i32
    return %arg0, %c0_i32 : i32, i32
  }
  func.func @transform_2(%arg0: i32) -> (i32, i32) {
    %c0_i32 = arith.constant 0 : i32
    %c0_i32_0 = arith.constant 0 : i32
    return %arg0, %c0_i32 : i32, i32
  }
  func.func @transform_3(%arg0: i32) -> (i32, i32) {
    %c0_i32 = arith.constant 0 : i32
    %c0_i32_0 = arith.constant 0 : i32
    return %arg0, %c0_i32 : i32, i32
  }
}

</mosaic_0001>

<bundles_post_ra>
// kernel: ema_update_packed.1
= control target key start
LH: loop header
LB: loop body
LE: loop exit
PB: predicated region body
PF: predicated region fallthrough
CT: control target
= control target key end

     0   :  { %9 = vsyncpa [#allocation4], 0  ;;  %s158_s0 = inlined_call_operand.<no memory space> [shape: f32[1], index: 0, kind: input, shape index: {}]   ;;  %s159_s1 = inlined_call_operand.hbm [shape: f32[8,128], index: 1, kind: input, shape index: {}, may-alias: {1,3}]   ;;  %s160_s2 = inlined_call_operand.vmem [shape: f32[8,128], index: 2, kind: input, shape index: {}]   ;;  %s161_s3 = inlined_call_operand.hbm [shape: f32[8,128], index: 3, kind: output, shape index: {}, may-alias: {1,3}]  }
   0x1   :  { %10 = vsyncpa [#allocation5], 0  ;;  %s103_s12 = smov [#allocation3]   ;;  %s55_s16 = scalar_lea.hbm %s159_s1, 128 }
   0x2   :  { %s19_s13 = sshll.u32 %s103_s12, 4  ;;  %p56_p0 = scmp.ne.s32.totalorder %s159_s1, %s55_s16  ;;  %s20_s13 = int_to_ptr.vmem [resolvable:$true] %s19_s13 }
   0x3   :  { %p59_p1 = scmp.lt.u32.totalorder %s55_s16, %s159_s1 }
   0x5   :  { %p61_p2 = pnand %p59_p1, %p56_p0 }
   0x7   :  { %64 = shalt.err (!%p61_p2)
}
   0x8   :  { %s65_s21 = scalar_lea.vmem %s20_s13, 128  ;;  %p70_p4 = scmp.lt.s32.totalorder %s20_s13, %s20_s13 }
   0x9   :  { %p66_p3 = scmp.ne.s32.totalorder %s20_s13, %s65_s21  ;;  %p71_p5 = scmp.lt.s32.totalorder %s65_s21, %s65_s21 }
   0xb   :  { %p72_p6 = por %p71_p5, %p70_p4 }
   0xd   :  { %p73_p7 = pnand %p72_p6, %p66_p3 }
   0xf   :  { %76 = shalt.err (!%p73_p7)
}
  0x10   :  { %22 = dma.hbm_to_vmem [thread:$0]  %s159_s1, 128, %s20_s13, [#allocation4]  }
  0x11   :  { %99 = dma.done.wait [#allocation4], 128  }
  0x12   :  { %100 = vsyncadd [#allocation4], 4294967168  ;;  %s33_s26 = ssub.f32 1.0, %s158_s0  ;;  %v30_v0 = vstv %s158_s0  ;;  %v29_v2 = vld [vmem:[#allocation3] sm:$0xff]  ;;  %s104_s4 = smov [#allocation6]  }
  0x13   :  { %v32_v3 = vld [vmem:[%s160_s2] sm:$0xff]  ;;  %s44_s5 = sshll.u32 %s104_s4, 4  ;;  %v31_v4 = vmul.f32 %v30_v0, %v29_v2  ;;  %s45_s5 = int_to_ptr.vmem [resolvable:$true] %s44_s5 }
  0x14   :  { %v34_v1 = vstv %s33_s26  ;;  %s77_s1 = scalar_lea.vmem %s45_s5, 128  ;;  %p82_p9 = scmp.lt.s32.totalorder %s45_s5, %s45_s5 }
  0x15   :  { %v35_v5 = vmul.f32 %v34_v1, %v32_v3  ;;  %p78_p8 = scmp.ne.s32.totalorder %s45_s5, %s77_s1  ;;  %p83_p10 = scmp.lt.s32.totalorder %s77_s1, %s77_s1 }
  0x17   :  { %v36_v6 = vadd.f32 %v35_v5, %v31_v4  ;;  %p84_p11 = por %p83_p10, %p82_p9 }
  0x19   :  { %37 = vst [vmem:[#allocation6] sm:$0xff] %v36_v6  ;;  %p85_p12 = pnand %p84_p11, %p78_p8 }
  0x1b   :  { %88 = shalt.err (!%p85_p12)
}
  0x1c   :  { %s89_s7 = scalar_lea.hbm %s161_s3, 128 }
  0x1d   :  { %p90_p13 = scmp.ne.s32.totalorder %s161_s3, %s89_s7  ;;  %p93_p0 = scmp.lt.u32.totalorder %s89_s7, %s161_s3 }
  0x1f   :  { %p95_p1 = pnand %p93_p0, %p90_p13 }
  0x21   :  { %98 = shalt.err (!%p95_p1)
}
  0x22   :  { %47 = dma.vmem_to_hbm [thread:$0]  %s45_s5, 128, %s161_s3, [#allocation5]  }
  0x23   :  { %101 = dma.done.wait [#allocation5], 128  }
  0x24   :  { %102 = vsyncadd [#allocation5], 4294967168 }
  0x25   :  { %51 = vsyncpa [#allocation4], 1 }
  0x26   :  { %52 = vsyncpa [#allocation5], 1 }

</bundles_post_ra>
